<compile_context>
chip_gen: v6e
topology: v6e:2x2x1
jax: 0.10.0
libtpu: 0.0.40
codegen_flags: <defaults>
</compile_context>

<pallas_src>
import jax
import jax.numpy as jnp
from jax import lax
from jax.experimental import pallas as pl
from jax.experimental.pallas import tpu as pltpu


def _round_up(x, m):
    return ((x + m - 1) // m) * m


def _vmem_limit_bytes():
    """Per-core VMEM limit derived from the chip (v5e/v6e ~128 MiB, v7x 64 MiB)."""
    try:
        cap = pltpu.get_tpu_info().vmem_capacity_bytes
    except Exception:
        cap = 64 * 1024 * 1024
    return int(cap * 0.8)          # leave headroom for compiler-internal scratch


def _choose_tq(n, cp, cqp, vmem_budget_bytes, max_tq=1024):
    """Largest query-tile size (multiple of 8, dividing N) whose live VMEM fits the budget."""
    # Bytes that scale with TQ: ~4 f32 (TQ,N) temporaries (energy / e / attn / slack),
    # double-buffered bf16 (TQ,N) attention output block, double-buffered f32
    # x / out tiles, plus the f32 ctx tile.
    per_row = 4 * 4 * n + 2 * 2 * n + (2 + 2 + 1) * 4 * cp
    # Fixed residents: double-buffered bf16 K / V blocks and the Wq block.
    fixed = 2 * 2 * n * (cqp + cp) + 2 * 2 * cp * cqp
    avail = max(vmem_budget_bytes - fixed, 8 * per_row)
    cap = int(min(max_tq, avail // per_row, n))
    cap = max(cap, 8)
    if n <= cap:
        return n
    for tq in range(cap - cap % 8, 7, -8):
        if n % tq == 0:
            return tq
    # TODO(synk): N with no multiple-of-8 divisor <= cap falls back to a full-N
    # tile; for very large awkward N this can exceed VMEM (add key tiling).
    return n


def _make_kernel(with_attn):
    """Grid = (batch, query-tile).  Kernel refs:

    x_tile_ref : (1, TQ, Cp)  f32   query tile of x (residual + Q source)
    k_ref      : (1, N,  Cqp) bf16  precomputed keys   (constant over q axis)
    v_ref      : (1, N,  Cp)  bf16  precomputed values (constant over q axis)
    wq_ref     : (Cp, Cqp)    bf16  padded query weight
    bq_ref     : (1, Cqp)     f32
    gamma_ref  : (1,)         f32   SMEM scalar
    out_ref    : (1, TQ, Cp)  f32   gamma * attn_out + x   (padded channels = 0)
    attn_ref   : (1, TQ, N)   bf16  softmax rows (only if with_attn)
    """
    def kernel(x_tile_ref, k_ref, v_ref, wq_ref, bq_ref, gamma_ref, *out_refs):
        out_ref = out_refs[0]
        x_tile = x_tile_ref[0]                                           # (TQ, Cp) f32

        # Q projection (1x1 conv == channel matmul), bf16 MXU / f32 acc.
        q = jnp.dot(x_tile.astype(jnp.bfloat16), wq_ref[...],
                    preferred_element_type=jnp.float32) + bq_ref[...]    # (TQ, Cqp)

        # energy[n, m] = <q_n, k_m>: contract last dims (no explicit k.T).
        energy = lax.dot_general(
            q.astype(jnp.bfloat16), k_ref[0],
            dimension_numbers=(((1,), (1,)), ((), ())),
            preferred_element_type=jnp.float32)                          # (TQ, N)

        # Softmax over keys — f32 math; exact reciprocal on the tiny (TQ,1)
        # denominator since the attention matrix is a contract output.
        m = jnp.max(energy, axis=-1, keepdims=True)
        e = jnp.exp(energy - m)
        denom = jnp.sum(e, axis=-1, keepdims=True)
        attn = e * (1.0 / denom)
        if with_attn:
            out_refs[1][0] = attn.astype(out_refs[1].dtype)              # bf16 writeback

        # out[n, :] = sum_m attn[n, m] * v[m, :]
        ctx = jnp.dot(attn.astype(jnp.bfloat16), v_ref[0],
                      preferred_element_type=jnp.float32)                # (TQ, Cp)
        out_ref[0] = gamma_ref[0] * ctx + x_tile
    return kernel


def self_attention_pallas(x_nchw, params, *, return_attention=True, max_tq=1024):
    """Forward pass matching SelfAttention.forward.

    Returns (out NCHW, attention (B,N,N) or None if return_attention=False)."""
    B, C, W, H = x_nchw.shape
    N = W * H
    Cq = C // 8
    Cp = _round_up(C, 128)        # lane-dense x / v / out channels
    Cqp = _round_up(Cq, 128)      # full-depth MXU contraction for energy

    f32, bf16 = jnp.float32, jnp.bfloat16

    vmem_limit = _vmem_limit_bytes()
    TQ = _choose_tq(N, Cp, Cqp, int(vmem_limit * 0.7), max_tq=max_tq)
    nq = N // TQ

    # glue: NCHW -> channel-last (B, N, C), f32.
    x_nc = jnp.transpose(x_nchw.reshape(B, C, N), (0, 2, 1)).astype(f32)   # (B, N, C)

    # K / V projections hoisted to XLA (f32 accumulate), fed to the kernel as
    # bf16 blocks that are constant over the query-tile grid axis.
    k = jnp.einsum("bnc,oc->bno", x_nc, params["wk"].astype(f32)) + params["bk"].astype(f32)
    v = jnp.einsum("bnc,oc->bno", x_nc, params["wv"].astype(f32)) + params["bv"].astype(f32)
    k_p = jnp.pad(k, ((0, 0), (0, 0), (0, Cqp - Cq))).astype(bf16)         # (B, N, Cqp)
    v_p = jnp.pad(v, ((0, 0), (0, 0), (0, Cp - C))).astype(bf16)           # (B, N, Cp)

    # x stays f32 (exact residual path); padded lanes are zero.
    x_p = jnp.pad(x_nc, ((0, 0), (0, 0), (0, Cp - C)))                     # (B, N, Cp)

    wq_p = jnp.pad(params["wq"].T.astype(f32),
                   ((0, Cp - C), (0, Cqp - Cq))).astype(bf16)              # (Cp, Cqp)
    bq_p = jnp.pad(params["bq"].astype(f32), (0, Cqp - Cq)).reshape(1, Cqp)
    gamma = params["gamma"].reshape(1).astype(f32)

    out_shapes = [jax.ShapeDtypeStruct((B, N, Cp), f32)]
    out_specs = [pl.BlockSpec((1, TQ, Cp), lambda b, q: (b, q, 0))]
    if return_attention:
        # Attention rows emitted in bf16: halves the dominant HBM writeback.
        out_shapes.append(jax.ShapeDtypeStruct((B, N, N), bf16))
        out_specs.append(pl.BlockSpec((1, TQ, N), lambda b, q: (b, q, 0)))

    results = pl.pallas_call(
        _make_kernel(return_attention),
        out_shape=tuple(out_shapes),
        grid_spec=pltpu.PrefetchScalarGridSpec(
            num_scalar_prefetch=0,
            grid=(B, nq),
            in_specs=[
                pl.BlockSpec((1, TQ, Cp), lambda b, q: (b, q, 0)),   # x query tile
                pl.BlockSpec((1, N, Cqp), lambda b, q: (b, 0, 0)),   # K (constant over q)
                pl.BlockSpec((1, N, Cp), lambda b, q: (b, 0, 0)),    # V (constant over q)
                pl.BlockSpec((Cp, Cqp), lambda b, q: (0, 0)),        # Wq (padded)
                pl.BlockSpec((1, Cqp), lambda b, q: (0, 0)),         # bq
                pl.BlockSpec(memory_space=pltpu.MemorySpace.SMEM),   # gamma scalar
            ],
            out_specs=out_specs,
        ),
        compiler_params=pltpu.CompilerParams(
            # No scratch carry across the q axis (K/V are inputs), so both grid
            # axes are parallel -> megacore can shard query tiles on v7x at B=1.
            dimension_semantics=("parallel", "parallel"),
            vmem_limit_bytes=vmem_limit,
        ),
    )(x_p, k_p, v_p, wq_p, bq_p, gamma)

    out_padded = results[0]
    out_nchw = jnp.transpose(out_padded[:, :, :C], (0, 2, 1)).reshape(B, C, W, H)
    if return_attention:
        return out_nchw, results[1].astype(f32)
    return out_nchw, None


def make_params(key, in_dim, use_sn=True):
    """Deterministic synthetic parameters with the shapes implied by __init__."""
    cq = in_dim // 8
    kq, kk, kv, kb1, kb2, kb3 = jax.random.split(key, 6)
    wq = jax.random.normal(kq, (cq, in_dim), jnp.float32) * 0.1   # Conv2d(in, in//8, 1) weight (squeezed)
    wk = jax.random.normal(kk, (cq, in_dim), jnp.float32) * 0.1
    wv = jax.random.normal(kv, (in_dim, in_dim), jnp.float32) * 0.1
    bq = jax.random.normal(kb1, (cq,), jnp.float32) * 0.1
    bk = jax.random.normal(kb2, (cq,), jnp.float32) * 0.1
    bv = jax.random.normal(kb3, (in_dim,), jnp.float32) * 0.1
    if use_sn:
        # spectral_norm at inference divides the weight by its largest singular value
        def sn(w):
            return w / jnp.linalg.svd(w, compute_uv=False)[0]
        wq, wk, wv = sn(wq), sn(wk), sn(wv)
    # nn.Parameter(torch.zeros(1)) -> gamma init 0; use nonzero so the
    # attention branch is actually exercised (set 0.0 to match fresh init).
    gamma = jnp.array([0.5], jnp.float32)
    return {"wq": wq, "wk": wk, "wv": wv, "bq": bq, "bk": bk, "bv": bv, "gamma": gamma}


def self_attention_reference(x_nchw, params):
    """Pure-JAX f32 reference mirroring the PyTorch forward (for verification)."""
    B, C, W, H = x_nchw.shape
    N = W * H
    x_cn = x_nchw.reshape(B, C, N)
    pq = jnp.einsum("oc,bcn->bon", params["wq"], x_cn) + params["bq"][None, :, None]
    pk = jnp.einsum("oc,bcn->bon", params["wk"], x_cn) + params["bk"][None, :, None]
    pv = jnp.einsum("oc,bcn->bon", params["wv"], x_cn) + params["bv"][None, :, None]
    energy = jnp.einsum("bon,bom->bnm", pq, pk)
    attention = jax.nn.softmax(energy, axis=-1)
    out = jnp.einsum("bcm,bnm->bcn", pv, attention).reshape(B, C, W, H)
    out = params["gamma"][0] * out + x_nchw
    return out, attention


if __name__ == "__main__":
    B, C, W, H = 2, 32, 8, 8          # in_dim=32 -> C//8=4, N=64
    key = jax.random.PRNGKey(0)
    kx, kp = jax.random.split(key)
    x = jax.random.normal(kx, (B, C, W, H), jnp.float32)
    params = make_params(kp, C, use_sn=True)

    out, attn = self_attention_pallas(x, params)
    out, attn = jax.block_until_ready((out, attn))

    out_ref, attn_ref = self_attention_reference(x, params)
    assert out.shape == (B, C, W, H) and attn.shape == (B, W * H, W * H)
    # bf16 MXU operands and bf16 attention writeback -> loosened tolerances vs f32 reference.
    assert jnp.allclose(attn, attn_ref, atol=1e-2, rtol=5e-2), \
        float(jnp.max(jnp.abs(attn - attn_ref)))
    assert jnp.allclose(out, out_ref, atol=5e-2, rtol=5e-2), \
        float(jnp.max(jnp.abs(out - out_ref)))

    print("KERNEL_OK")
</pallas_src>

<mosaic_0001>
module attributes {stable_mosaic.version = 11 : i64} {
  func.func @kernel(%arg0: i32, %arg1: i32, %arg2: memref<1x64x128xf32, #tpu.memory_space<vmem>>, %arg3: memref<1x64x128xbf16, #tpu.memory_space<vmem>>, %arg4: memref<1x64x128xbf16, #tpu.memory_space<vmem>>, %arg5: memref<128x128xbf16, #tpu.memory_space<vmem>>, %arg6: memref<1x128xf32, #tpu.memory_space<vmem>>, %arg7: memref<1xf32, #tpu.memory_space<smem>>, %arg8: memref<1x64x128xf32, #tpu.memory_space<vmem>>, %arg9: memref<1x64x64xbf16, #tpu.memory_space<vmem>>) attributes {dimension_semantics = [#tpu.dimension_semantics<parallel>, #tpu.dimension_semantics<parallel>], iteration_bounds = array<i64: 2, 1>, scalar_prefetch = 0 : i64, scratch_operands = 0 : i64, tpu.core_type = #tpu.core_type<tc>, window_params = [{transform_indices = @transform_0, window_bounds = array<i64: 1, 64, 128>}, {transform_indices = @transform_1, window_bounds = array<i64: 1, 64, 128>}, {transform_indices = @transform_2, window_bounds = array<i64: 1, 64, 128>}, {pipeline_mode = #tpu.pipeline_mode<synchronous>, transform_indices = @transform_3, window_bounds = array<i64: 128, 128>}, {pipeline_mode = #tpu.pipeline_mode<synchronous>, transform_indices = @transform_4, window_bounds = array<i64: 1, 128>}, {transform_indices = @transform_5, window_bounds = array<i64: 1>}, {transform_indices = @transform_6, window_bounds = array<i64: 1, 64, 128>}, {transform_indices = @transform_7, window_bounds = array<i64: 1, 64, 64>}]} {
    %c0 = arith.constant 0 : index
    %c0_0 = arith.constant 0 : index
    %c0_1 = arith.constant 0 : index
    %0 = vector.load %arg2[%c0, %c0_0, %c0_1] : memref<1x64x128xf32, #tpu.memory_space<vmem>>, vector<1x64x128xf32>
    %1 = vector.shape_cast %0 : vector<1x64x128xf32> to vector<64x128xf32>
    %2 = arith.truncf %1 : vector<64x128xf32> to vector<64x128xbf16>
    %c0_2 = arith.constant 0 : index
    %c0_3 = arith.constant 0 : index
    %3 = vector.load %arg5[%c0_2, %c0_3] : memref<128x128xbf16, #tpu.memory_space<vmem>>, vector<128x128xbf16>
    %cst = arith.constant dense<0.000000e+00> : vector<64x128xf32>
    %4 = tpu.matmul %2, %3, %cst {dimension_numbers = #tpu.dot_dimension_numbers<[1], [0], [0], [1], [0, 0, 1, 1], [], []>} : vector<64x128xbf16>, vector<128x128xbf16>, vector<64x128xf32> -> vector<64x128xf32>
    %c0_4 = arith.constant 0 : index
    %c0_5 = arith.constant 0 : index
    %5 = vector.load %arg6[%c0_4, %c0_5] : memref<1x128xf32, #tpu.memory_space<vmem>>, vector<1x128xf32>
    %6 = vector.broadcast %5 : vector<1x128xf32> to vector<64x128xf32>
    %7 = arith.addf %4, %6 : vector<64x128xf32>
    %8 = arith.truncf %7 : vector<64x128xf32> to vector<64x128xbf16>
    %c0_6 = arith.constant 0 : index
    %c0_7 = arith.constant 0 : index
    %c0_8 = arith.constant 0 : index
    %9 = vector.load %arg3[%c0_6, %c0_7, %c0_8] : memref<1x64x128xbf16, #tpu.memory_space<vmem>>, vector<1x64x128xbf16>
    %10 = vector.shape_cast %9 : vector<1x64x128xbf16> to vector<64x128xbf16>
    %cst_9 = arith.constant dense<0.000000e+00> : vector<64x64xf32>
    %11 = tpu.matmul %8, %10, %cst_9 {dimension_numbers = #tpu.dot_dimension_numbers<[1], [1], [0], [0], [0, 0, 1, 0], [], []>} : vector<64x128xbf16>, vector<64x128xbf16>, vector<64x64xf32> -> vector<64x64xf32>
    %cst_10 = arith.constant dense<0xFF800000> : vector<64xf32>
    %12 = vector.multi_reduction <maximumf>, %11, %cst_10 [1] : vector<64x64xf32> to vector<64xf32>
    %13 = vector.shape_cast %12 : vector<64xf32> to vector<64x1xf32>
    %14 = vector.broadcast %13 : vector<64x1xf32> to vector<64x64xf32>
    %15 = arith.subf %11, %14 : vector<64x64xf32>
    %16 = math.exp %15 : vector<64x64xf32>
    %cst_11 = arith.constant dense<0.000000e+00> : vector<64xf32>
    %17 = vector.multi_reduction <add>, %16, %cst_11 [1] : vector<64x64xf32> to vector<64xf32>
    %18 = vector.shape_cast %17 : vector<64xf32> to vector<64x1xf32>
    %cst_12 = arith.constant 1.000000e+00 : f32
    %19 = vector.broadcast %cst_12 : f32 to vector<64x1xf32>
    %20 = arith.divf %19, %18 : vector<64x1xf32>
    %21 = vector.broadcast %20 : vector<64x1xf32> to vector<64x64xf32>
    %22 = arith.mulf %16, %21 : vector<64x64xf32>
    %23 = arith.truncf %22 : vector<64x64xf32> to vector<64x64xbf16>
    %c0_13 = arith.constant 0 : index
    %c0_14 = arith.constant 0 : index
    %c0_15 = arith.constant 0 : index
    %24 = vector.load %arg9[%c0_13, %c0_14, %c0_15] : memref<1x64x64xbf16, #tpu.memory_space<vmem>>, vector<1x64x64xbf16>
    %25 = vector.shape_cast %24 : vector<1x64x64xbf16> to vector<64x64xbf16>
    %26 = vector.shape_cast %23 : vector<64x64xbf16> to vector<1x64x64xbf16>
    tpu.vector_store %arg9[%c0_13, %c0_14, %c0_15], %26 {strides = array<i32>} : memref<1x64x64xbf16, #tpu.memory_space<vmem>>, vector<1x64x64xbf16>,
    %27 = arith.truncf %22 : vector<64x64xf32> to vector<64x64xbf16>
    %c0_16 = arith.constant 0 : index
    %c0_17 = arith.constant 0 : index
    %c0_18 = arith.constant 0 : index
    %28 = vector.load %arg4[%c0_16, %c0_17, %c0_18] : memref<1x64x128xbf16, #tpu.memory_space<vmem>>, vector<1x64x128xbf16>
    %29 = vector.shape_cast %28 : vector<1x64x128xbf16> to vector<64x128xbf16>
    %cst_19 = arith.constant dense<0.000000e+00> : vector<64x128xf32>
    %30 = tpu.matmul %27, %29, %cst_19 {dimension_numbers = #tpu.dot_dimension_numbers<[1], [0], [0], [1], [0, 0, 1, 1], [], []>} : vector<64x64xbf16>, vector<64x128xbf16>, vector<64x128xf32> -> vector<64x128xf32>
    %c0_20 = arith.constant 0 : index
    %31 = memref.load %arg7[%c0_20] : memref<1xf32, #tpu.memory_space<smem>>
    %32 = vector.broadcast %31 : f32 to vector<64x128xf32>
    %33 = arith.mulf %32, %30 : vector<64x128xf32>
    %34 = arith.addf %33, %1 : vector<64x128xf32>
    %c0_21 = arith.constant 0 : index
    %c0_22 = arith.constant 0 : index
    %c0_23 = arith.constant 0 : index
    %35 = vector.load %arg8[%c0_21, %c0_22, %c0_23] : memref<1x64x128xf32, #tpu.memory_space<vmem>>, vector<1x64x128xf32>
    %36 = vector.shape_cast %35 : vector<1x64x128xf32> to vector<64x128xf32>
    %37 = vector.shape_cast %34 : vector<64x128xf32> to vector<1x64x128xf32>
    tpu.vector_store %arg8[%c0_21, %c0_22, %c0_23], %37 {strides = array<i32>} : memref<1x64x128xf32, #tpu.memory_space<vmem>>, vector<1x64x128xf32>,
    return
  }
  func.func @transform_0(%arg0: i32, %arg1: i32) -> (i32, i32, i32) {
    %c0_i32 = arith.constant 0 : i32
    %c0_i32_0 = arith.constant 0 : i32
    return %arg0, %arg1, %c0_i32 : i32, i32, i32
  }
  func.func @transform_1(%arg0: i32, %arg1: i32) -> (i32, i32, i32) {
    %c0_i32 = arith.constant 0 : i32
    %c0_i32_0 = arith.constant 0 : i32
    %c0_i32_1 = arith.constant 0 : i32
    return %arg0, %c0_i32, %c0_i32_0 : i32, i32, i32
  }
  func.func @transform_2(%arg0: i32, %arg1: i32) -> (i32, i32, i32) {
    %c0_i32 = arith.constant 0 : i32
    %c0_i32_0 = arith.constant 0 : i32
    %c0_i32_1 = arith.constant 0 : i32
    return %arg0, %c0_i32, %c0_i32_0 : i32, i32, i32
  }
  func.func @transform_3(%arg0: i32, %arg1: i32) -> (i32, i32) {
    %c0_i32 = arith.constant 0 : i32
    %c0_i32_0 = arith.constant 0 : i32
    %c0_i32_1 = arith.constant 0 : i32
    return %c0_i32, %c0_i32_0 : i32, i32
  }
  func.func @transform_4(%arg0: i32, %arg1: i32) -> (i32, i32) {
    %c0_i32 = arith.constant 0 : i32
    %c0_i32_0 = arith.constant 0 : i32
    %c0_i32_1 = arith.constant 0 : i32
    return %c0_i32, %c0_i32_0 : i32, i32
  }
  func.func @transform_5(%arg0: i32, %arg1: i32) -> i32 {
    %c0_i32 = arith.constant 0 : i32
    %c0_i32_0 = arith.constant 0 : i32
    return %c0_i32 : i32
  }
  func.func @transform_6(%arg0: i32, %arg1: i32) -> (i32, i32, i32) {
    %c0_i32 = arith.constant 0 : i32
    %c0_i32_0 = arith.constant 0 : i32
    return %arg0, %arg1, %c0_i32 : i32, i32, i32
  }
  func.func @transform_7(%arg0: i32, %arg1: i32) -> (i32, i32, i32) {
    %c0_i32 = arith.constant 0 : i32
    %c0_i32_0 = arith.constant 0 : i32
    return %arg0, %arg1, %c0_i32 : i32, i32, i32
  }
}

</mosaic_0001>

<bundles_post_ra>
// kernel: tpu_custom_call.1
= control target key start
LH: loop header
LB: loop body
LE: loop exit
PB: predicated region body
PF: predicated region fallthrough
CT: control target
= control target key end

     0   :  { %s2157_s0 = inlined_call_operand.hbm [shape: f32[2,64,128], index: 0, kind: input, shape index: {}]   ;;  %s2158_s1 = inlined_call_operand.hbm [shape: bf16[2,64,128], index: 1, kind: input, shape index: {}]   ;;  %s2159_s2 = inlined_call_operand.hbm [shape: bf16[2,64,128], index: 2, kind: input, shape index: {}]   ;;  %s2160_s3 = inlined_call_operand.hbm [shape: bf16[128,128], index: 3, kind: input, shape index: {}]   ;;  %s2161_s4 = inlined_call_operand.vmem [shape: f32[1,128], index: 4, kind: input, shape index: {}]   ;;  %s2162_s5 = inlined_call_operand.<no memory space> [shape: f32[1], index: 5, kind: input, shape index: {}]   ;;  %s2163_s6 = inlined_call_operand.hbm [shape: f32[2,64,128], index: 6, kind: output, shape index: {0}]   ;;  %s2164_s7 = inlined_call_operand.hbm [shape: bf16[2,64,64], index: 7, kind: output, shape index: {1}]  }
   0x1   :  { %2173 = sst [smem:[#allocation22_spill]] %s2157_s0 }
   0x2   :  { %2174 = sst [smem:[#allocation23_spill]] %s2158_s1 }
   0x3   :  { %2175 = sst [smem:[#allocation24_spill]] %s2159_s2 }
   0x4   :  { %13 = sst [smem:[#allocation2]] %s2162_s5 }
   0x5   :  { %14 = vsyncpa [#allocation4], 0 }
   0x6   :  { %16 = vsyncpa [#allocation4 + $0x1], 0 }
   0x7   :  { %17 = vsyncpa [#allocation7], 0 }
   0x8   :  { %19 = vsyncpa [#allocation7 + $0x1], 0 }
   0x9   :  { %20 = vsyncpa [#allocation10], 0 }
   0xa   :  { %21 = vsyncpa [#allocation5], 0 }
   0xb   :  { %23 = vsyncpa [#allocation5 + $0x1], 0 }
   0xc   :  { %24 = vsyncpa [#allocation13], 0 }
   0xd   :  { %26 = vsyncpa [#allocation13 + $0x1], 0  ;;  %s1755_s26 = smov 0   ;;  %s1757_s27 = smov 0  }
   0xe   :  { %s1759_s28 = smov 0   ;;  %s1761_s29 = smov 0  }
   0xf   :  { %s1763_s30 = smov 0   ;;  %s1765_s5 = smov 0  }
  0x10 LB: > { %2176 = sst [smem:[#allocation19_spill]] %s1692_s30  ;;  %s44_s8 = sadd.s32 1, %s1692_s30  ;;  %s1696_s5 = sphi %s1765_s5, %s32_s5   ;;  %s1692_s30 = sphi %s1763_s30, %s2197_s30   ;;  %s1688_s29 = sphi %s1761_s29, %s2196_s29   ;;  %s1684_s28 = sphi %s1759_s28, %s2200_s28   ;;  %s1680_s27 = sphi %s1757_s27, %s2199_s27   ;;  %s1676_s26 = sphi %s1755_s26, %s2198_s26  }
  0x11   : > { %s53_s9 = sadd.s32 1, %s1684_s28  ;;  %p46_p0 = scmp.ge.s32.totalorder %s44_s8, 2 }
  0x12   : > { %p60_p1 = scmp.ne.s32.totalorder %s1684_s28, %s1680_s27  ;;  %p61_p2 = scmp.eq.s32.totalorder %s1696_s5, 0 }
  0x13   : > { %s2202_s8 = smov (%p46_p0, %s44_s8), 0  ;;  %p1360_p6 = scmp.lt.s32.totalorder %s1696_s5, 2 }
  0x14   : > { %2177 = sst [smem:[#allocation20_spill]] %s2202_s8  ;;  %p62_p3 = por %p61_p2, %p60_p1 }
  0x15   : > { %s48_s10 = ssub.s32 %s1692_s30, %s2202_s8  ;;  %s1800_s11 = sand.u32 1, %s1684_s28  }
  0x16   : > { %p51_p5 = scmp.eq.s32.totalorder %s48_s10, 0  ;;  %s303_s12 = sand.u32 1, %s1696_s5  }
  0x17   : > { %p1806_p7 = pnand %p1360_p6, %p62_p3  ;;  %s1169_s15 = sshll.u32 %s1800_s11, 5 }
  0x18   : > { %s1804_s13 = scalar_select %p51_p5, %s1684_s28, %s53_s9  }
  0x19   : > { %s1220_s16 = sshll.u32 %s1692_s30, 9  ;;  %s2180_s1 = sld [smem:[#allocation23_spill]] }
  0x1a   : > { %2178 = sst [smem:[#allocation21_spill]] %s1804_s13  ;;  %s307_s20 = scalar_lea.vmem [#allocation6], %s1169_s15 }
  0x1b   : > { %s314_s21 = sshll.u32 %s307_s20, 4  ;;  %s1815_s22 = scalar_lea.sflag [#allocation7], %s303_s12  ;;  %s315_s21 = int_to_ptr.vmem [resolvable:$true] %s314_s21 }
  0x1c   : > { %p2171_p8 = pneg %p1806_p7  ;;  %s1481_s23 = scalar_lea.vmem %s315_s21, 512 }
  0x1d   : > { %p1482_p9 = scmp.ne.s32.totalorder %s315_s21, %s1481_s23  ;;  %s1698_s24 = smov [#allocation6]  }
  0x1e   : > { %s1486_s25 = sshll.u32 %s1698_s24, 4  ;;  %s1487_s25 = int_to_ptr.vmem [resolvable:$false] %s1486_s25 }
  0x1f   : > { %s313_s19 = scalar_lea.hbm %s2180_s1, %s1220_s16  ;;  %p1484_p10 = pnand %p1482_p9, %p2171_p8 }
  0x20   : > { %s1488_s9 = scalar_lea.vmem %s1487_s25, 1024  ;;  %p1489_p12 = scmp.lt.s32.totalorder %s315_s21, %s1487_s25 }
  0x21   : > { %p1485_p11 = pneg %p1484_p10  ;;  %p1490_p13 = scmp.lt.s32.totalorder %s1488_s9, %s1481_s23 }
  0x23   : > { %p1491_p0 = por %p1490_p13, %p1489_p12 }
  0x25   : > { %p1492_p2 = pnand %p1491_p0, %p1485_p11 }
  0x27   : > { %1495 = shalt.err (!%p1492_p2)
}
  0x28   : > { %s2165_s10 = smov 64   ;;  %s2167_s12 = smov 4  }
  0x29   : > { %1348 = dma.hbm_to_vmem [thread:$0]  (!%p1806_p7), %s313_s19, 512, %s315_s21, %s1815_s22, %s2165_s10, %s2165_s10, %s2167_s12  }
  0x2a   : > { %s2181_s2 = sld [smem:[#allocation24_spill]]  ;;  %s328_s23 = scalar_lea.vmem [#allocation8], %s1169_s15 }
  0x2b   : > { %s335_s24 = sshll.u32 %s328_s23, 4  ;;  %s1836_s25 = sadd.s32 4294967295, %s1696_s5   ;;  %s1833_s24 = int_to_ptr.vmem [resolvable:$true] %s335_s24 }
  0x2c   : > { %s1162_s9 = sadd.s32 4294967294, %s1696_s5   ;;  %p66_p3 = scmp.ne.s32.totalorder %s1680_s27, %s1676_s26 }
  0x2d   : > { %p2170_p5 = scmp.eq.s32.totalorder %s1836_s25, 0  ;;  %p207_p6 = scmp.eq.s32.totalorder %s1836_s25, 1 }
  0x2e   : > { %p213_p9 = scmp.eq.s32.totalorder %s1162_s9, 1  ;;  %p1163_p10 = scmp.ge.s32.totalorder %s1696_s5, 1 }
  0x2f   : > { %p1846_p11 = por %p2170_p5, %p66_p3  ;;  %p1853_p12 = por %p207_p6, %p60_p1 }
  0x30   : > { %s1831_s20 = scalar_lea.hbm %s2181_s2, %s1220_s16  ;;  %p1857_p13 = por %p213_p9, %p66_p3 }
  0x31   : > { %p248_p0 = scmp.lt.s32.totalorder %s1696_s5, 3  ;;  %s1701_s17 = smov [#allocation9]  }
  0x32   : > { %s260_s18 = sshll.u32 %s1701_s17, 4  ;;  %s1166_s23 = sshll.u32 %s1800_s11, 6  ;;  %s261_s18 = int_to_ptr.vmem [resolvable:$true] %s260_s18 }
  0x33   : > { %p1862_p2 = pnand %p1163_p10, %p248_p0  ;;  %s1219_s9 = sshll.u32 %s1692_s30, 10 }
  0x34   : > { %s2187_s0 = sld [smem:[#allocation22_spill]]  ;;  %s284_s8 = scalar_lea.vmem [#allocation3], %s1166_s23 }
  0x35   : > { %p1338_p4 = pneg %p1862_p2  ;;  %s293_s13 = sshll.u32 %s284_s8, 4  ;;  %s1881_s13 = int_to_ptr.vmem [resolvable:$true] %s293_s13 }
  0x36   : > { %s1507_s17 = scalar_lea.vmem %s261_s18, 1024 }
  0x37   : > { %p1872_p1 = pnand %p1338_p4, %p2170_p5  ;;  %p1508_p6 = scmp.ne.s32.totalorder %s261_s18, %s1507_s17 }
  0x38   : > { %p1515_p4 = scmp.lt.s32.totalorder %s261_s18, %s261_s18  ;;  %p1516_p0 = scmp.lt.s32.totalorder %s1507_s17, %s1507_s17 }
  0x39   : > { %p1498_p3 = pneg %p1872_p1 }
  0x3a   : > { %s1879_s2 = scalar_lea.hbm %s2187_s0, %s1219_s9  ;;  %p1517_p5 = por %p1516_p0, %p1515_p4 }
  0x3b   : > { %p1510_p9 = pnand %p1508_p6, %p1498_p3 }
  0x3d   : > { %p1511_p10 = pneg %p1510_p9 }
  0x3f   : > { %p1518_p8 = pnand %p1517_p5, %p1511_p10 }
  0x41   : > { %1521 = shalt.err (!%p1518_p8)
}
  0x42   : > { %s2188_s1 = smov 4   ;;  %s2189_s12 = smov 64  }
  0x43   : > { %1341 = dma.hbm_to_vmem [thread:$0]  (!%p1872_p1), %s2160_s3, 1024, %s261_s18, [#allocation10], %s2189_s12, %s2189_s12, %s2188_s1  }
  0x44   : > { %s281_s9 = scalar_lea.sflag [#allocation4], %s1800_s11  ;;  %s1535_s0 = scalar_lea.vmem %s1881_s13, 1024 }
  0x45   : > { %p1536_p3 = scmp.ne.s32.totalorder %s1881_s13, %s1535_s0  ;;  %p2190_p5 = pneg %p1806_p7 }
  0x46   : > { %s1702_s10 = smov [#allocation3]  }
  0x47   : > { %p1538_p8 = pnand %p1536_p3, %p2190_p5  ;;  %s1540_s17 = sshll.u32 %s1702_s10, 4  ;;  %s1541_s17 = int_to_ptr.vmem [resolvable:$false] %s1540_s17 }
  0x48   : > { %s1542_s30 = scalar_lea.vmem %s1541_s17, 2048  ;;  %p1543_p9 = scmp.lt.s32.totalorder %s1881_s13, %s1541_s17 }
  0x49   : > { %p1539_p6 = pneg %p1538_p8  ;;  %p1544_p10 = scmp.lt.s32.totalorder %s1542_s30, %s1535_s0 }
  0x4b   : > { %p1545_p4 = por %p1544_p10, %p1543_p9 }
  0x4d   : > { %p1546_p0 = pnand %p1545_p4, %p1539_p6 }
  0x4f   : > { %1549 = shalt.err (!%p1546_p0)
}
  0x50   : > { %s1703_s23 = smov 128   ;;  %s1704_s11 = smov 8  }
  0x51   : > { %1345 = dma.hbm_to_vmem [thread:$0]  (!%p1806_p7), %s1879_s2, 1024, %s1881_s13, %s281_s9, %s1703_s23, %s1703_s23, %s1704_s11  }
  0x52   : > { %s1563_s18 = scalar_lea.vmem %s1833_s24, 512  ;;  %p2191_p3 = pmov %p2190_p5 }
  0x53   : > { %p1564_p1 = scmp.ne.s32.totalorder %s1833_s24, %s1563_s18  ;;  %s1705_s0 = smov [#allocation8]  }
  0x54   : > { %s1568_s30 = sshll.u32 %s1705_s0, 4  ;;  %s1569_s30 = int_to_ptr.vmem [resolvable:$false] %s1568_s30 }
  0x55   : > { %p1566_p5 = pnand %p1564_p1, %p2191_p3  ;;  %s1570_s8 = scalar_lea.vmem %s1569_s30, 1024 }
  0x56   : > { %p1571_p6 = scmp.lt.s32.totalorder %s1833_s24, %s1569_s30  ;;  %p1572_p9 = scmp.lt.s32.totalorder %s1570_s8, %s1563_s18 }
  0x57   : > { %p1567_p8 = pneg %p1566_p5 }
  0x58   : > { %p1573_p10 = por %p1572_p9, %p1571_p6 }
  0x5a   : > { %p1574_p4 = pnand %p1573_p10, %p1567_p8 }
  0x5c   : > { %1577 = shalt.err (!%p1574_p4)
}
  0x5d   : > { %1351 = dma.hbm_to_vmem [thread:$0]  (!%p1806_p7), %s1831_s20, 512, %s1833_s24, %s1815_s22, %s2189_s12, %s2189_s12, %s2188_s1  }
  0x5e   : > { %347 = sbr.rel (%p1862_p2) target bundleno = 1086 (0x43e), region = 44  ;;  %s1921_s2 = sand.u32 (!%p1862_p2), 1, %s1680_s27  }
  0x5f   : > { %s1176_s13 = sshll.u32 (!%p1862_p2), %s1921_s2, 6  ;;  %s350_s9 = scalar_lea.sflag (!%p1862_p2), [#allocation4], %s1921_s2 }
  0x60   : > { %s1927_s14 = scalar_lea.vmem (!%p1862_p2), [#allocation3], %s1176_s13 }
  0x63   : > { %1655 = dma.done.wait (%p1846_p11), %s350_s9, 1024  }
  0x64   : > { %1657 = vsyncadd (%p1846_p11), %s350_s9, 4294966272  ;;  %s358_s22 = sand.u32 1, %s1836_s25   ;;  %s1935_s20 = sshll.u32 %s1921_s2, 5 }
  0x65   : > { %s359_s24 = scalar_lea.sflag [#allocation7], %s358_s22  ;;  %s1938_s21 = scalar_lea.vmem [#allocation6], %s1935_s20 }
  0x66   : > { %1659 = dma.done.wait (%p1846_p11), %s359_s24, 1024  }
  0x67   : > { %1661 = vsyncadd (%p1846_p11), %s359_s24, 4294966272  ;;  %s1945_s1 = scalar_lea.vmem [#allocation8], %s1935_s20  ;;  %p2192_p7 = scmp.eq.s32.totalorder %s1836_s25, 0 }
  0x69   : > { %1663 = dma.done.wait (%p2192_p7), [#allocation10], 1024   ;;  %p2193_p2 = pmov %p2192_p7 }
  0x6a   : > { %v1420_v0 = vld [vmem:[#allocation9 + $0x38] sm:$0xff]   ;;  %v1421_v1 = vld [vmem:[#allocation9 + $0x30] sm:$0xff]   ;;  %v1422_v2 = vld [vmem:[#allocation9 + $0x28] sm:$0xff]   ;;  %vm674_vm0 = vcmask 523264   ;;  %vm803_vm1 = vcmask 519168   ;;  %s2032_s12 = scalar_lea.vmem [#allocation12], %s1935_s20 }
  0x6b   : > { %1665 = vsyncadd (%p2193_p2), [#allocation10], 4294966272  ;;  %1260 = vmatprep.subr.bf16.mxu0 %v1420_v0  ;;  %v1423_v3 = vld [vmem:[#allocation9 + $0x20] sm:$0xff]   ;;  %v1955_v5 = vld [vmem:[%s1927_s14 + $0x8] sm:$0xff]  ;;  %s1231_s10 = sshll.u32 %s1688_s29, 9  ;;  %s986_s17 = sshll.u32 %s2032_s12, 4  ;;  %s2068_s17 = int_to_ptr.vmem [resolvable:$true] %s986_s17 }
  0x6c   : > { %1261 = vmatpush3.bf16.msra.mxu0 %v1420_v0  ;;  %v1952_v4 = vld [vmem:[%s1927_s14] sm:$0xff]  ;;  %v1424_v7 = vld [vmem:[#allocation9 + $0x18] sm:$0xff]   ;;  %v1429_v9 = vld [vmem:[%s1938_s21 + $0x10] sm:$0xff]   ;;  %s2066_s18 = scalar_lea.hbm %s2164_s7, %s1231_s10  ;;  %s953_s0 = scalar_lea.sflag [#allocation13], %s1921_s2 }
  0x6d   : > { %1262 = vmatprep.subr.bf16.mxu0 %v1421_v1  ;;  %v433_v6 = vpack.c.bf16 %v1955_v5, %v1952_v4  ;;  %v1428_v8 = vld [vmem:[%s1938_s21 + $0x18] sm:$0xff]   ;;  %v1425_v10 = vld [vmem:[#allocation9 + $0x10] sm:$0xff]   ;;  %v1430_v11 = vld [vmem:[%s1938_s21 + $0x8] sm:$0xff]   ;;  %s1578_s30 = scalar_lea.vmem %s2068_s17, 512  ;;  %s1706_s8 = smov [#allocation12]  }
  0x6e   : > { %1284 = vmatprep.subr.bf16.mxu1 %v1428_v8  ;;  %v1426_v12 = vld [vmem:[#allocation9 + $0x8] sm:$0xff]   ;;  %v1427_v13 = vld [vmem:[#allocation9] sm:$0xff]   ;;  %v1963_v14 = vld [vmem:[%s1927_s14 + $0x10] sm:$0xff]  ;;  %p1579_p11 = scmp.ne.s32.totalorder %s2068_s17, %s1578_s30  ;;  %s1582_s9 = sshll.u32 %s1706_s8, 4  ;;  %s1583_s9 = int_to_ptr.vmem [resolvable:$false] %s1582_s9 }
  0x6f   : > { %1276 = vmatprep.mubr.bf16.mxu0 %v433_v6  ;;  %1285 = vmatpush3.bf16.xpose.msra.mxu1 %v1428_v8  ;;  %v1966_v15 = vld [vmem:[%s1927_s14 + $0x18] sm:$0xff]  ;;  %v1969_v16 = vld [vmem:[%s1927_s14 + $0x20] sm:$0xff]  ;;  %v1972_v17 = vld [vmem:[%s1927_s14 + $0x28] sm:$0xff]  ;;  %p1585_p3 = scmp.lt.s32.totalorder %s2068_s17, %s1583_s9 }
  0x70   : > { %1263 = vmatpush3.bf16.msra.mxu0 %v1421_v1  ;;  %1286 = vmatprep.subr.bf16.mxu1 %v1429_v9  ;;  %v434_v18 = vpack.c.bf16 %v1966_v15, %v1963_v14  ;;  %v435_v19 = vpack.c.bf16 %v1972_v17, %v1969_v16  ;;  %v1979_v20 = vld [vmem:[%s1927_s14 + $0x30] sm:$0xff]  ;;  %v1982_v21 = vld [vmem:[%s1927_s14 + $0x38] sm:$0xff]  ;;  %v1431_v23 = vld [vmem:[%s1938_s21] sm:$0xff]   ;;  %p1580_p0 = pnand %p1579_p11, %p1853_p12  ;;  %s1584_s14 = scalar_lea.vmem %s1583_s9, 1024 }
  0x71   : > { %1264 = vmatprep.subr.bf16.mxu0 %v1422_v2  ;;  %v436_v22 = vpack.c.bf16 %v1982_v21, %v1979_v20  ;;  %v1182_v27 = vld [vmem:[%s2161_s4] ss:$0 sm:$0xff]  ;;  %p1586_p5 = scmp.lt.s32.totalorder %s1584_s14, %s1578_s30 }
  0x72   : > { %p1581_p1 = pneg %p1580_p0 }
  0x73   : > { %p1587_p8 = por %p1586_p5, %p1585_p3 }
  0x74   : > { %1265 = vmatpush3.bf16.msra.mxu0 %v1422_v2 }
  0x75   : > { %1266 = vmatprep.subr.bf16.mxu0 %v1423_v3  ;;  %p1588_p6 = pnand %p1587_p8, %p1581_p1 }
  0x77   : > { %1287 = vmatpush3.bf16.xpose.msra.mxu1 %v1429_v9 }
  0x78   : > { %1267 = vmatpush3.bf16.msra.mxu0 %v1423_v3  ;;  %1288 = vmatprep.subr.bf16.mxu1 %v1430_v11 }
  0x79   : > { %1268 = vmatprep.subr.bf16.mxu0 %v1424_v7 }
  0x7c   : > { %1269 = vmatpush3.bf16.msra.mxu0 %v1424_v7 }
  0x7d   : > { %1270 = vmatprep.subr.bf16.mxu0 %v1425_v10 }
  0x7f   : > { %1289 = vmatpush3.bf16.xpose.msra.mxu1 %v1430_v11 }
  0x80   : > { %1271 = vmatpush3.bf16.msra.mxu0 %v1425_v10  ;;  %1290 = vmatprep.subr.bf16.mxu1 %v1431_v23 }
  0x81   : > { %1272 = vmatprep.subr.bf16.mxu0 %v1426_v12 }
  0x84   : > { %1273 = vmatpush3.bf16.msra.mxu0 %v1426_v12 }
  0x85   : > { %1274 = vmatprep.subr.bf16.mxu0 %v1427_v13 }
  0x87   : > { %1291 = vmatpush3.bf16.xpose.msra.mxu1 %v1431_v23 }
  0x88   : > { %1275 = vmatpush3.bf16.msra.mxu0 %v1427_v13 }
  0x8b   : > { %1277 = vmatmul.mubr.bf16.vlgmr.msra.gmra.mxu0 %v434_v18 }
  0x8c   : > { %1280 = vmatprep.mubr.bf16.mxu0 %v435_v19 }
  0x93   : > { %1281 = vmatmul.mubr.bf16.gmra.mxu0 %v436_v22 }
 0x14b   : > { %v1278_v24 = vpop.f32.mrf.mxu0 }
 0x14c   : > { %v551_v32 = vadd.f32 %v1278_v24, %v1182_v27 }
 0x14d   : > { %v542_v25 = vpop.f32.mrf.mxu0 }
 0x14e   : > { %v543_v30 = vadd.f32 %v1182_v27, %v542_v25 }
 0x14f   : > { %v1279_v26 = vpop.f32.mrf.mxu0 }
 0x150   : > { %v554_v28 = vadd.f32 %v1279_v26, %v1182_v27 }
 0x151   : > { %v545_v29 = vpop.f32.mrf.mxu0 }
 0x152   : > { %v546_v31 = vadd.f32 %v1182_v27, %v545_v29  ;;  %v574_v35 = vpack.c.bf16 %v554_v28, %v551_v32 }
 0x153   : > { %v1282_v33 = vpop.f32.mrf.mxu0 }
 0x154   : > { %v573_v34 = vpack.c.bf16 %v546_v31, %v543_v30  ;;  %v567_v42 = vadd.f32 %v1282_v33, %v1182_v27 }
 0x155   : > { %v558_v36 = vpop.f32.mrf.mxu0 }
 0x156   : > { %1292 = vmatprep.mubr.bf16.mxu1 %v573_v34  ;;  %v559_v40 = vadd.f32 %v1182_v27, %v558_v36 }
 0x157   : > { %v1283_v37 = vpop.f32.mrf.mxu0  ;;  %1293 = vmatmul.mubr.bf16.vlgmr.msra.gmra.mxu1 %v574_v35 }
 0x158   : > { %v570_v38 = vadd.f32 %v1283_v37, %v1182_v27 }
 0x159   : > { %v561_v39 = vpop.f32.mrf.mxu0 }
 0x15a   : > { %v562_v41 = vadd.f32 %v1182_v27, %v561_v39  ;;  %v576_v44 = vpack.c.bf16 %v570_v38, %v567_v42 }
 0x15c   : > { %v575_v43 = vpack.c.bf16 %v562_v41, %v559_v40 }
 0x15e   : > { %1296 = vmatprep.mubr.bf16.mxu1 %v575_v43 }
 0x15f   : > { %1297 = vmatmul.mubr.bf16.gmra.mxu1 %v576_v44 }
 0x217   : > { %v1294_v45 = vpop.f32.mrf.mxu1 }
 0x218   : > { %v681_v46 = vsel %vm674_vm0, %v1294_v45, -inf }
 0x219   : > { %682 = vmax.xlane.f32.xlu0 %v681_v46  ;;  %v643_v47 = vpop.f32.mrf.mxu1  ;;  %v1433_v46 = vld [vmem:[%s1945_s1 + $0x10] sm:$0xff]  }
 0x21a   : > { %v675_v49 = vsel %vm674_vm0, %v643_v47, -inf }
 0x21b   : > { %v1295_v48 = vpop.f32.mrf.mxu1 }
 0x21c   : > { %v684_v50 = vsel %vm674_vm0, %v1295_v48, -inf }
 0x21d   : > { %676 = vmax.xlane.f32.xlu0 %v675_v49  ;;  %685 = vmax.xlane.f32.xlu1 %v684_v50  ;;  %v646_v51 = vpop.f32.mrf.mxu1 }
 0x21e   : > { %v678_v53 = vsel %vm674_vm0, %v646_v51, -inf }
 0x21f   : > { %v1298_v52 = vpop.f32.mrf.mxu1 }
 0x220   : > { %v693_v57 = vsel %vm674_vm0, %v1298_v52, -inf }
 0x221   : > { %679 = vmax.xlane.f32.xlu0 %v678_v53  ;;  %v659_v54 = vpop.f32.mrf.mxu1 }
 0x222   : > { %v687_v55 = vsel %vm674_vm0, %v659_v54, -inf }
 0x223   : > { %688 = vmax.xlane.f32.xlu1 %v687_v55  ;;  %v1299_v56 = vpop.f32.mrf.mxu1 }
 0x224   : > { %v696_v60 = vsel %vm674_vm0, %v1299_v56, -inf }
 0x225   : > { %694 = vmax.xlane.f32.xlu0 %v693_v57  ;;  %v662_v58 = vpop.f32.mrf.mxu1 }
 0x226   : > { %v690_v59 = vsel %vm674_vm0, %v662_v58, -inf }
 0x227   : > { %691 = vmax.xlane.f32.xlu1 %v690_v59 }
 0x22b   : > { %697 = vmax.xlane.f32.xlu1 %v696_v60 }
 0x2a2   : > { %v683_v61 = vpop.xlane.xlu0 %682 }
 0x2a3   : > { %v701_v62 = vsub.f32 %v1294_v45, %v683_v61  ;;  %v1432_v45 = vld [vmem:[%s1945_s1 + $0x18] sm:$0xff]  }
 0x2a4   : > { %1300 = vmatprep.subr.bf16.mxu0 %v1432_v45  ;;  %1316 = vmatprep.subr.bf16.mxu1 %v1432_v45 }
 0x2a5   : > { %v711_v63 = vmul.f32 1.442695, %v701_v62  ;;  %1301 = vmatpush3.bf16.msra.mxu0 %v1432_v45  ;;  %1320 = vmatpush3.bf16.msra.mxu1 %v1432_v45 }
 0x2a6   : > { %v677_v0 = vpop.xlane.xlu0 %676  ;;  %v686_v1 = vpop.xlane.xlu1 %685  ;;  %1302 = vmatprep.subr.bf16.mxu0 %v1433_v46  ;;  %1317 = vmatprep.subr.bf16.mxu1 %v1433_v46 }
 0x2a7   : > { %1436 = vpow2.f32 %v711_v63  ;;  %v699_v2 = vsub.f32 %v643_v47, %v677_v0  ;;  %v702_v3 = vsub.f32 %v1295_v48, %v686_v1  ;;  %v1434_v47 = vld [vmem:[%s1945_s1 + $0x8] sm:$0xff]   ;;  %v1435_v48 = vld [vmem:[%s1945_s1] sm:$0xff]  }
 0x2a9   : > { %v707_v6 = vmul.f32 1.442695, %v699_v2  ;;  %v713_v7 = vmul.f32 1.442695, %v702_v3  ;;  %1303 = vmatpush3.bf16.msra.mxu0 %v1433_v46  ;;  %1321 = vmatpush3.bf16.msra.mxu1 %v1433_v46 }
 0x2aa   : > { %v680_v8 = vpop.xlane.xlu0 %679  ;;  %1304 = vmatprep.subr.bf16.mxu0 %v1434_v47  ;;  %1318 = vmatprep.subr.bf16.mxu1 %v1434_v47 }
 0x2ab   : > { %1438 = vpow2.f32 %v707_v6  ;;  %v700_v9 = vsub.f32 %v646_v51, %v680_v8 }
 0x2ac   : > { %1440 = vpow2.f32 %v713_v7  ;;  %v689_v10 = vpop.xlane.xlu1 %688 }
 0x2ad   : > { %v709_v11 = vmul.f32 1.442695, %v700_v9  ;;  %v703_v12 = vsub.f32 %v659_v54, %v689_v10  ;;  %1305 = vmatpush3.bf16.msra.mxu0 %v1434_v47  ;;  %1322 = vmatpush3.bf16.msra.mxu1 %v1434_v47 }
 0x2ae   : > { %v695_v13 = vpop.xlane.xlu0 %694  ;;  %1306 = vmatprep.subr.bf16.mxu0 %v1435_v48  ;;  %1319 = vmatprep.subr.bf16.mxu1 %v1435_v48 }
 0x2af   : > { %1442 = vpow2.f32 %v709_v11  ;;  %v715_v18 = vmul.f32 1.442695, %v703_v12  ;;  %v705_v19 = vsub.f32 %v1298_v52, %v695_v13 }
 0x2b0   : > { %v692_v22 = vpop.xlane.xlu1 %691 }
 0x2b1   : > { %1444 = vpow2.f32 %v715_v18  ;;  %v719_v23 = vmul.f32 1.442695, %v705_v19  ;;  %v704_v24 = vsub.f32 %v662_v58, %v692_v22  ;;  %1307 = vmatpush3.bf16.msra.mxu0 %v1435_v48  ;;  %1323 = vmatpush3.bf16.msra.mxu1 %v1435_v48 }
 0x2b3   : > { %1446 = vpow2.f32 %v719_v23  ;;  %v717_v25 = vmul.f32 1.442695, %v704_v24 }
 0x2b4   : > { %v1437_v26 = vpop.eup %1436  ;;  %v698_v27 = vpop.xlane.xlu1 %697 }
 0x2b5   : > { %1448 = vpow2.f32 %v717_v25  ;;  %v706_v28 = vsub.f32 %v1299_v56, %v698_v27  ;;  %v729_v29 = vsel %vm674_vm0, %v1437_v26, 0.0 }
 0x2b6   : > { %730 = vadd.xlane.f32.xlu0 %v729_v29 }
 0x2b7   : > { %v721_v30 = vmul.f32 1.442695, %v706_v28 }
 0x2b8   : > { %v1999_v31 = vpop.eup %1438 }
 0x2b9   : > { %v2001_v32 = vpop.eup %1440  ;;  %1450 = vpow2.f32 %v721_v30  ;;  %v723_v33 = vsel %vm674_vm0, %v1999_v31, 0.0 }
 0x2ba   : > { %724 = vadd.xlane.f32.xlu0 %v723_v33  ;;  %v732_v34 = vsel %vm674_vm0, %v2001_v32, 0.0 }
 0x2bb   : > { %733 = vadd.xlane.f32.xlu1 %v732_v34 }
 0x2bc   : > { %v2007_v35 = vpop.eup %1442 }
 0x2bd   : > { %v726_v36 = vsel %vm674_vm0, %v2007_v35, 0.0 }
 0x2be   : > { %v2011_v37 = vpop.eup %1444 }
 0x2bf   : > { %727 = vadd.xlane.f32.xlu1 %v726_v36  ;;  %v735_v38 = vsel %vm674_vm0, %v2011_v37, 0.0 }
 0x2c0   : > { %v2015_v39 = vpop.eup %1446  ;;  %736 = vadd.xlane.f32.xlu0 %v735_v38 }
 0x2c1   : > { %v741_v41 = vsel %vm674_vm0, %v2015_v39, 0.0 }
 0x2c2   : > { %v2017_v40 = vpop.eup %1448 }
 0x2c3   : > { %v738_v42 = vsel %vm674_vm0, %v2017_v40, 0.0 }
 0x2c4   : > { %742 = vadd.xlane.f32.xlu0 %v741_v41  ;;  %739 = vadd.xlane.f32.xlu1 %v738_v42 }
 0x2c6   : > { %v2023_v43 = vpop.eup %1450 }
 0x2c7   : > { %v744_v44 = vsel %vm674_vm0, %v2023_v43, 0.0 }
 0x2c8   : > { %745 = vadd.xlane.f32.xlu1 %v744_v44 }
 0x33f   : > { %v731_v49 = vpop.xlane.xlu0 %730 }
 0x340   : > { %1452 = vrcp.f32 %v731_v49 }
 0x343   : > { %v725_v50 = vpop.xlane.xlu0 %724 }
 0x344   : > { %1454 = vrcp.f32 %v725_v50  ;;  %v734_v51 = vpop.xlane.xlu1 %733 }
 0x345   : > { %1456 = vrcp.f32 %v734_v51 }
 0x348   : > { %v728_v52 = vpop.xlane.xlu1 %727 }
 0x349   : > { %1458 = vrcp.f32 %v728_v52  ;;  %v737_v53 = vpop.xlane.xlu0 %736 }
 0x34a   : > { %1460 = vrcp.f32 %v737_v53 }
 0x34d   : > { %v1453_v54 = vpop.eup %1452  ;;  %v743_v55 = vpop.xlane.xlu0 %742 }
 0x34e   : > { %v740_v56 = vpop.xlane.xlu1 %739  ;;  %v765_v57 = vmul.f32 %v1453_v54, %v1437_v26  ;;  %1462 = vrcp.f32 %v743_v55 }
 0x34f   : > { %1464 = vrcp.f32 %v740_v56 }
 0x350   : > { %v1224_v58 = vpack.c.bf16 %v765_v57, %v765_v57 }
 0x351   : > { %v1455_v59 = vpop.eup %1454 }
 0x352   : > { %v746_v60 = vpop.xlane.xlu1 %745  ;;  %v1457_v61 = vpop.eup %1456  ;;  %806 = vst.msk [vmem:[%s2032_s12 + $0x8] sm:$0xf] %vm803_vm1, %v1224_v58  ;;  %v763_v62 = vmul.f32 %v1455_v59, %v1999_v31 }
 0x353   : > { %1466 = vrcp.f32 %v746_v60  ;;  %v766_v63 = vmul.f32 %v1457_v61, %v2001_v32 }
 0x354   : > { %v1222_v0 = vpack.c.bf16 %v763_v62, %v763_v62 }
 0x355   : > { %v1225_v1 = vpack.c.bf16 %v766_v63, %v766_v63  ;;  %v772_v10 = vpack.c.bf16 %v766_v63, %v765_v57 }
 0x356   : > { %v1459_v2 = vpop.eup %1458  ;;  %804 = vst.msk [vmem:[%s2032_s12] sm:$0xf] %vm803_vm1, %v1222_v0 }
 0x357   : > { %v1461_v3 = vpop.eup %1460  ;;  %807 = vst.msk [vmem:[%s2032_s12 + $0xc] sm:$0xf] %vm803_vm1, %v1225_v1  ;;  %v764_v6 = vmul.f32 %v1459_v2, %v2007_v35 }
 0x358   : > { %v767_v7 = vmul.f32 %v1461_v3, %v2011_v37 }
 0x359   : > { %v771_v8 = vpack.c.bf16 %v764_v6, %v763_v62  ;;  %v1223_v9 = vpack.c.bf16 %v764_v6, %v764_v6 }
 0x35a   : > { %v1226_v11 = vpack.c.bf16 %v767_v7, %v767_v7 }
 0x35b   : > { %v1463_v12 = vpop.eup %1462  ;;  %805 = vst.msk [vmem:[%s2032_s12 + $0x4] sm:$0xf] %vm803_vm1, %v1223_v9  ;;  %1308 = vmatprep.mubr.msk.bf16.mxu0 %vm674_vm0, %v771_v8 }
 0x35c   : > { %v1465_v13 = vpop.eup %1464  ;;  %v769_v18 = vmul.f32 %v1463_v12, %v2015_v39  ;;  %1309 = vmatmul.mubr.msk.bf16.vlgmr.msra.gmra.mxu0 %vm674_vm0, %v772_v10  ;;  %808 = vst.msk [vmem:[%s2032_s12 + $0x10] sm:$0xf] %vm803_vm1, %v1226_v11 }
 0x35d   : > { %v768_v19 = vmul.f32 %v1465_v13, %v2017_v40 }
 0x35e   : > { %v1228_v22 = vpack.c.bf16 %v769_v18, %v769_v18 }
 0x35f   : > { %v773_v24 = vpack.c.bf16 %v768_v19, %v767_v7  ;;  %v1227_v25 = vpack.c.bf16 %v768_v19, %v768_v19 }
 0x360   : > { %v1467_v23 = vpop.eup %1466  ;;  %810 = vst.msk [vmem:[%s2032_s12 + $0x18] sm:$0xf] %vm803_vm1, %v1228_v22 }
 0x361   : > { %v770_v26 = vmul.f32 %v1467_v23, %v2023_v43  ;;  %809 = vst.msk [vmem:[%s2032_s12 + $0x14] sm:$0xf] %vm803_vm1, %v1227_v25  ;;  %1312 = vmatprep.mubr.msk.bf16.mxu1 %vm674_vm0, %v773_v24 }
 0x363   : > { %v774_v27 = vpack.c.bf16 %v770_v26, %v769_v18  ;;  %v1229_v28 = vpack.c.bf16 %v770_v26, %v770_v26 }
 0x365   : > { %811 = vst.msk [vmem:[%s2032_s12 + $0x1c] sm:$0xf] %vm803_vm1, %v1229_v28  ;;  %1313 = vmatmul.mubr.msk.bf16.vlgmr.msra.gmra.mxu1 %vm674_vm0, %v774_v27 }
 0x366   : > { %1591 = shalt.err (!%p1588_p6)
}
 0x367   : > { %s1592_s22 = scalar_lea.hbm %s2066_s18, 512  ;;  %s1596_s21 = scalar_lea.hbm %s2164_s7, 1024 }
 0x368   : > { %p1593_p9 = scmp.ne.s32.totalorder %s2066_s18, %s1592_s22  ;;  %p1597_p7 = scmp.lt.s32.totalorder %s2066_s18, %s2164_s7 }
 0x369   : > { %p1598_p2 = scmp.lt.s32.totalorder %s1596_s21, %s1592_s22 }
 0x36a   : > { %p1594_p10 = pnand %p1593_p9, %p1853_p12 }
 0x36b   : > { %p1599_p11 = por %p1598_p2, %p1597_p7 }
 0x36c   : > { %p1595_p4 = pneg %p1594_p10 }
 0x36e   : > { %p1600_p0 = pnand %p1599_p11, %p1595_p4 }
 0x370   : > { %1603 = shalt.err (!%p1600_p0)
}
 0x371   : > { %s1707_s15 = smov 64   ;;  %s1708_s12 = smov 4  }
 0x372   : > { %1335 = dma.vmem_to_hbm [thread:$0]  (%p1853_p12), %s2068_s17, 512, %s2066_s18, %s953_s0, %s1707_s15, %s1707_s15, %s1708_s12  }
 0x373   : > { %s921_s10 = sld [smem:[#allocation2]]  ;;  %s413_s23 = scalar_lea.vmem [#allocation11], %s1176_s13 }
 0x374   : > { %s968_s13 = sshll.u32 %s413_s23, 4  ;;  %s1230_s17 = sshll.u32 %s1688_s29, 10  ;;  %s2102_s13 = int_to_ptr.vmem [resolvable:$true] %s968_s13 }
 0x375   : > { %s2108_s0 = scalar_lea.hbm %s2163_s6, %s1230_s17  ;;  %s948_s29 = scalar_lea.sflag [#allocation5], %s1921_s2 }
 0x376   : > { %s1604_s30 = scalar_lea.vmem %s2102_s13, 1024  ;;  %s1709_s8 = smov [#allocation11]  }
 0x377   : > { %p1605_p1 = scmp.ne.s32.totalorder %s2102_s13, %s1604_s30  ;;  %s1608_s9 = sshll.u32 %s1709_s8, 4  ;;  %s1609_s9 = int_to_ptr.vmem [resolvable:$false] %s1608_s9 }
 0x378   : > { %s1610_s14 = scalar_lea.vmem %s1609_s9, 2048  ;;  %p1611_p8 = scmp.lt.s32.totalorder %s2102_s13, %s1609_s9 }
 0x379   : > { %v922_v29 = vstv %s921_s10  ;;  %p1606_p3 = pnand %p1605_p1, %p1853_p12  ;;  %p1612_p6 = scmp.lt.s32.totalorder %s1610_s14, %s1604_s30 }
 0x37b   : > { %p1607_p5 = pneg %p1606_p3  ;;  %p1613_p9 = por %p1612_p6, %p1611_p8 }
 0x37d   : > { %p1614_p10 = pnand %p1613_p9, %p1607_p5 }
 0x41c   : > { %v1310_v30 = vpop.f32.mrf.mxu0 }
 0x41d   : > { %v925_v31 = vmul.f32 %v1310_v30, %v922_v29 }
 0x41e   : > { %v890_v32 = vpop.f32.mrf.mxu0 }
 0x41f   : > { %v933_v33 = vadd.f32 %v925_v31, %v1963_v14  ;;  %v923_v34 = vmul.f32 %v922_v29, %v890_v32 }
 0x420   : > { %v1311_v35 = vpop.f32.mrf.mxu0 }
 0x421   : > { %941 = vst [vmem:[%s413_s23 + $0x10] sm:$0xff] %v933_v33  ;;  %v931_v36 = vadd.f32 %v923_v34, %v1952_v4  ;;  %v926_v37 = vmul.f32 %v1311_v35, %v922_v29 }
 0x422   : > { %v893_v38 = vpop.f32.mrf.mxu0 }
 0x423   : > { %939 = vst [vmem:[%s413_s23] sm:$0xff] %v931_v36  ;;  %v934_v39 = vadd.f32 %v926_v37, %v1966_v15  ;;  %v924_v40 = vmul.f32 %v922_v29, %v893_v38 }
 0x425   : > { %v1314_v41 = vpop.f32.mrf.mxu1  ;;  %942 = vst [vmem:[%s413_s23 + $0x18] sm:$0xff] %v934_v39  ;;  %v932_v42 = vadd.f32 %v924_v40, %v1955_v5 }
 0x426   : > { %v929_v43 = vmul.f32 %v1314_v41, %v922_v29 }
 0x427   : > { %v906_v14 = vpop.f32.mrf.mxu1  ;;  %940 = vst [vmem:[%s413_s23 + $0x8] sm:$0xff] %v932_v42 }
 0x428   : > { %v937_v44 = vadd.f32 %v929_v43, %v1979_v20  ;;  %v927_v45 = vmul.f32 %v922_v29, %v906_v14 }
 0x429   : > { %v1315_v4 = vpop.f32.mrf.mxu1 }
 0x42a   : > { %945 = vst [vmem:[%s413_s23 + $0x30] sm:$0xff] %v937_v44  ;;  %v935_v46 = vadd.f32 %v927_v45, %v1969_v16  ;;  %v930_v47 = vmul.f32 %v1315_v4, %v922_v29 }
 0x42b   : > { %v909_v15 = vpop.f32.mrf.mxu1 }
 0x42c   : > { %943 = vst [vmem:[%s413_s23 + $0x20] sm:$0xff] %v935_v46  ;;  %v938_v5 = vadd.f32 %v930_v47, %v1982_v21  ;;  %v928_v20 = vmul.f32 %v922_v29, %v909_v15 }
 0x42e   : > { %946 = vst [vmem:[%s413_s23 + $0x38] sm:$0xff] %v938_v5  ;;  %v936_v16 = vadd.f32 %v928_v20, %v1972_v17 }
 0x430   : > { %944 = vst [vmem:[%s413_s23 + $0x28] sm:$0xff] %v936_v16 }
 0x431   : > { %1617 = shalt.err (!%p1614_p10)
}
 0x432   : > { %s1618_s22 = scalar_lea.hbm %s2108_s0, 1024  ;;  %s1622_s21 = scalar_lea.hbm %s2163_s6, 2048 }
 0x433   : > { %p1619_p4 = scmp.ne.s32.totalorder %s2108_s0, %s1618_s22  ;;  %p1623_p11 = scmp.lt.s32.totalorder %s2108_s0, %s2163_s6 }
 0x434   : > { %p1624_p0 = scmp.lt.s32.totalorder %s1622_s21, %s1618_s22 }
 0x435   : > { %p1620_p7 = pnand %p1619_p4, %p1853_p12 }
 0x436   : > { %p1625_p1 = por %p1624_p0, %p1623_p11 }
 0x437   : > { %p1621_p2 = pneg %p1620_p7 }
 0x439   : > { %p1626_p3 = pnand %p1625_p1, %p1621_p2 }
 0x43b   : > { %1629 = shalt.err (!%p1626_p3)
}
 0x43c   : > { %s1710_s15 = smov 128   ;;  %s1711_s12 = smov 8  }
 0x43d   : > { %1334 = dma.vmem_to_hbm [thread:$0]  (%p1853_p12), %s2102_s13, 1024, %s2108_s0, %s948_s29, %s1710_s15, %s1710_s15, %s1711_s12  }
 0x43e PF: > { %s1001_s10 = sand.u32 1, %s1676_s26   ;;  %p2194_p5 = scmp.ge.s32.totalorder %s1696_s5, 2 }
 0x43f   : > { %s1002_s23 = scalar_lea.sflag [#allocation5], %s1001_s10 }
 0x440   : > { %p1353_p8 = pnand %p2194_p5, %p1857_p13 }
 0x442   : > { %p1354_p6 = pneg %p1353_p8 }
 0x444   : > { %1667 = dma.done.wait (%p1354_p6), %s1002_s23, 1024  }
 0x445   : > { %1669 = vsyncadd (%p1354_p6), %s1002_s23, 4294966272  ;;  %s1011_s17 = scalar_lea.sflag [#allocation13], %s1001_s10 }
 0x446   : > { %1671 = dma.done.wait (%p1354_p6), %s1011_s17, 512  }
 0x447   : > { %1673 = vsyncadd (%p1354_p6), %s1011_s17, 4294966784  ;;  %s32_s5 = sadd.s32 1, %s1696_s5   ;;  %s2195_s16 = sld [smem:[#allocation21_spill]] }
 0x448   : > { %p29_p9 = scmp.ge.s32.totalorder %s32_s5, 4   ;;  %s2196_s29 = sld [smem:[#allocation19_spill]] }
 0x449   : > { %s2197_s30 = sld [smem:[#allocation20_spill]]  ;;  %s2198_s26 = smov %s1680_s27 }
 0x44a   : > { %s2199_s27 = smov %s1684_s28  ;;  %31 = sbr.rel (!%p29_p9) target bundleno = 16 (0x10), region = 134 }
 0x44d   : > { %s2200_s28 = smov %s2195_s16 }
 0x44f   :  { %1016 = vsyncpa [#allocation4], 1 }
 0x450   :  { %1018 = vsyncpa [#allocation4 + $0x1], 1 }
 0x451   :  { %1019 = vsyncpa [#allocation7], 1 }
 0x452   :  { %1021 = vsyncpa [#allocation7 + $0x1], 1 }
 0x453   :  { %1022 = vsyncpa [#allocation10], 1 }
 0x454   :  { %1023 = vsyncpa [#allocation5], 1 }
 0x455   :  { %1025 = vsyncpa [#allocation5 + $0x1], 1 }
 0x456   :  { %1026 = vsyncpa [#allocation13], 1 }
 0x457   :  { %1028 = vsyncpa [#allocation13 + $0x1], 1 }

</bundles_post_ra>
